<compile_context>
chip_gen: v7x
topology: tpu7x:2x2x1
jax: 0.10.0
libtpu: 0.0.40
codegen_flags: <defaults>
</compile_context>

<pallas_src>
from functools import partial

import jax
import jax.numpy as jnp
from jax.experimental import pallas as pl
from jax.experimental.pallas import tpu as pltpu


def _concat_pool_kernel(x_ref, o_ref, max_acc, sum_acc, *, hw, tk, mask_tail):
    """One (TN, TC, TK) tile of the (N, C, H*W) input.

    Grid = (batch tiles, channel tiles, spatial tiles); the spatial axis is the
    innermost ("arbitrary") reduction axis.
    """
    k = pl.program_id(2)
    nk = pl.num_programs(2)

    @pl.when(k == 0)
    def _init():
        max_acc[...] = jnp.full_like(max_acc, -jnp.inf)
        sum_acc[...] = jnp.zeros_like(sum_acc)

    x = x_ref[...]  # (TN, TC, TK)

    if mask_tail:
        # Last spatial tile may extend past H*W: padded lanes hold garbage, so
        # mask them out of both reductions.
        lane = jax.lax.broadcasted_iota(jnp.int32, x.shape, dimension=2)
        valid = (k * tk + lane) < hw
        x_max = jnp.where(valid, x, jnp.array(-jnp.inf, dtype=x.dtype))
        x_sum = jnp.where(valid, x, jnp.array(0, dtype=x.dtype))
    else:
        x_max = x
        x_sum = x

    max_acc[...] = jnp.maximum(
        max_acc[...], jnp.max(x_max, axis=-1).astype(jnp.float32)
    )
    # Accumulate in f32 without materializing an explicit f32 copy of the tile.
    sum_acc[...] = sum_acc[...] + jnp.sum(x_sum, axis=-1, dtype=jnp.float32)

    @pl.when(k == nk - 1)
    def _finalize():
        # Direct half-writes (no lane-axis concatenate).
        o_ref[:, 0, :] = max_acc[...].astype(o_ref.dtype)
        o_ref[:, 1, :] = (sum_acc[...] * (1.0 / hw)).astype(o_ref.dtype)


def _choose_tiles(N, C, HW, itemsize, target_bytes):
    """Pick (TN, TC, TK) so each input buffer is ~<= target_bytes."""
    # Channel tile: full C unless batch is tiny and C splits into lane-aligned
    # halves -> extra "parallel" grid steps so both v7x TensorCores get work.
    TC = C
    if N < 4 and C % 256 == 0:
        TC = C // 2

    # Spatial (reduction) tile: whole H*W when the (TC, HW) slab is already
    # small, otherwise a multiple of 128 sized to ~target_bytes so the DMA
    # pipeline has many steps and per-step VMEM stays bounded on all gens.
    slab_bytes = TC * HW * itemsize
    if slab_bytes <= target_bytes or HW <= 128:
        TK = HW
    else:
        lanes = (target_bytes // (TC * itemsize)) // 128 * 128
        TK = int(max(128, min(lanes, (HW // 128) * 128)))

    # Batch tile: fold several samples per step when each sample slab is tiny
    # (amortizes the ~0.35us/step overhead with one large contiguous DMA).
    TN = 1
    if TK == HW and TC == C:
        TN = int(max(1, min(N, target_bytes // max(slab_bytes, 1))))
    return TN, TC, TK


def adaptive_concat_pool2d(x, *, target_block_bytes=2 * 1024 * 1024):
    """x: (N, C, H, W) -> (N, 2C, 1, 1), concat of max-pool and avg-pool to 1x1."""
    N, C, H, W = x.shape
    HW = H * W
    itemsize = jnp.dtype(x.dtype).itemsize

    TN, TC, TK = _choose_tiles(N, C, HW, itemsize, target_block_bytes)
    n_b = pl.cdiv(N, TN)
    n_c = C // TC
    n_k = pl.cdiv(HW, TK)
    mask_tail = (HW % TK) != 0

    x_flat = x.reshape(N, C, HW)
    kernel = partial(_concat_pool_kernel, hw=HW, tk=TK, mask_tail=mask_tail)

    out = pl.pallas_call(
        kernel,
        out_shape=jax.ShapeDtypeStruct((N, 2, C), x.dtype),
        grid=(n_b, n_c, n_k),
        in_specs=[pl.BlockSpec((TN, TC, TK), lambda b, c, k: (b, c, k))],
        out_specs=pl.BlockSpec((TN, 2, TC), lambda b, c, k: (b, 0, c)),
        scratch_shapes=[
            pltpu.VMEM((TN, TC), jnp.float32),  # running max
            pltpu.VMEM((TN, TC), jnp.float32),  # running f32 sum
        ],
        compiler_params=pltpu.CompilerParams(
            dimension_semantics=("parallel", "parallel", "arbitrary"),
        ),
    )(x_flat)

    # (N, 2, C) -> (N, 2C, 1, 1): row-major reshape gives channel order
    # [max 0..C-1, avg 0..C-1], matching torch.cat([mp(x), ap(x)], dim=1).
    return out.reshape(N, 2 * C, 1, 1)


def _reference(x):
    mx = jnp.max(x, axis=(2, 3), keepdims=True)
    av = jnp.mean(x, axis=(2, 3), keepdims=True)
    return jnp.concatenate([mx, av], axis=1)


if __name__ == "__main__":
    key = jax.random.PRNGKey(0)
    k1, k2 = jax.random.split(key)

    # 1) Small NCHW input consistent with the module's forward (single-block path).
    x = jax.random.normal(k1, (2, 4, 16, 16), dtype=jnp.float32)
    out = jax.block_until_ready(adaptive_concat_pool2d(x))
    ref = _reference(x)
    assert out.shape == (2, 8, 1, 1), out.shape
    assert jnp.allclose(out, ref, atol=1e-5, rtol=1e-5), "mismatch vs reference (full block)"

    # 2) Same kernel with a tiny block budget to exercise the tiled-reduction
    #    path (spatial accumulation + masked partial tail tile).
    x2 = jax.random.normal(k2, (3, 8, 20, 20), dtype=jnp.float32)
    out2 = jax.block_until_ready(
        adaptive_concat_pool2d(x2, target_block_bytes=4096)
    )
    ref2 = _reference(x2)
    assert out2.shape == (3, 16, 1, 1), out2.shape
    assert jnp.allclose(out2, ref2, atol=1e-5, rtol=1e-5), "mismatch vs reference (tiled)"

    print("KERNEL_OK")
</pallas_src>

<mosaic_0001>
module attributes {stable_mosaic.version = 11 : i64} {
  func.func @_concat_pool_kernel(%arg0: i32, %arg1: i32, %arg2: i32, %arg3: memref<2x4x256xf32, #tpu.memory_space<vmem>>, %arg4: memref<2x2x4xf32, #tpu.memory_space<vmem>>, %arg5: memref<2x4xf32, #tpu.memory_space<vmem>>, %arg6: memref<2x4xf32, #tpu.memory_space<vmem>>) attributes {dimension_semantics = [#tpu.dimension_semantics<parallel>, #tpu.dimension_semantics<parallel>, #tpu.dimension_semantics<arbitrary>], iteration_bounds = array<i64: 1, 1, 1>, scalar_prefetch = 0 : i64, scratch_operands = 2 : i64, tpu.core_type = #tpu.core_type<tc>, window_params = [{transform_indices = @transform_0, window_bounds = array<i64: 2, 4, 256>}, {transform_indices = @transform_1, window_bounds = array<i64: 2, 2, 4>}]} {
    %c0_i32 = arith.constant 0 : i32
    %0 = arith.cmpi eq, %arg2, %c0_i32 : i32
    %1 = arith.extui %0 : i1 to i32
    %c0_i32_0 = arith.constant 0 : i32
    %2 = arith.cmpi ne, %1, %c0_i32_0 : i32
    scf.if %2 {
      %cst_14 = arith.constant 0xFF800000 : f32
      %15 = vector.broadcast %cst_14 : f32 to vector<2x4xf32>
      %c0_15 = arith.constant 0 : index
      %c0_16 = arith.constant 0 : index
      %16 = vector.load %arg5[%c0_15, %c0_16] : memref<2x4xf32, #tpu.memory_space<vmem>>, vector<2x4xf32>
      tpu.vector_store %arg5[%c0_15, %c0_16], %15 {strides = array<i32>} : memref<2x4xf32, #tpu.memory_space<vmem>>, vector<2x4xf32>,
      %cst_17 = arith.constant 0.000000e+00 : f32
      %17 = vector.broadcast %cst_17 : f32 to vector<2x4xf32>
      %c0_18 = arith.constant 0 : index
      %c0_19 = arith.constant 0 : index
      %18 = vector.load %arg6[%c0_18, %c0_19] : memref<2x4xf32, #tpu.memory_space<vmem>>, vector<2x4xf32>
      tpu.vector_store %arg6[%c0_18, %c0_19], %17 {strides = array<i32>} : memref<2x4xf32, #tpu.memory_space<vmem>>, vector<2x4xf32>,
    } else {
    }
    %c0 = arith.constant 0 : index
    %c0_1 = arith.constant 0 : index
    %c0_2 = arith.constant 0 : index
    %3 = vector.load %arg3[%c0, %c0_1, %c0_2] : memref<2x4x256xf32, #tpu.memory_space<vmem>>, vector<2x4x256xf32>
    %c0_3 = arith.constant 0 : index
    %c0_4 = arith.constant 0 : index
    %4 = vector.load %arg5[%c0_3, %c0_4] : memref<2x4xf32, #tpu.memory_space<vmem>>, vector<2x4xf32>
    %cst = arith.constant dense<0xFF800000> : vector<2x4xf32>
    %5 = vector.multi_reduction <maximumf>, %3, %cst [2] : vector<2x4x256xf32> to vector<2x4xf32>
    %6 = arith.maximumf %4, %5 : vector<2x4xf32>
    %c0_5 = arith.constant 0 : index
    %c0_6 = arith.constant 0 : index
    %7 = vector.load %arg5[%c0_5, %c0_6] : memref<2x4xf32, #tpu.memory_space<vmem>>, vector<2x4xf32>
    tpu.vector_store %arg5[%c0_5, %c0_6], %6 {strides = array<i32>} : memref<2x4xf32, #tpu.memory_space<vmem>>, vector<2x4xf32>,
    %c0_7 = arith.constant 0 : index
    %c0_8 = arith.constant 0 : index
    %8 = vector.load %arg6[%c0_7, %c0_8] : memref<2x4xf32, #tpu.memory_space<vmem>>, vector<2x4xf32>
    %cst_9 = arith.constant dense<0.000000e+00> : vector<2x4xf32>
    %9 = vector.multi_reduction <add>, %3, %cst_9 [2] : vector<2x4x256xf32> to vector<2x4xf32>
    %10 = arith.addf %8, %9 : vector<2x4xf32>
    %c0_10 = arith.constant 0 : index
    %c0_11 = arith.constant 0 : index
    %11 = vector.load %arg6[%c0_10, %c0_11] : memref<2x4xf32, #tpu.memory_space<vmem>>, vector<2x4xf32>
    tpu.vector_store %arg6[%c0_10, %c0_11], %10 {strides = array<i32>} : memref<2x4xf32, #tpu.memory_space<vmem>>, vector<2x4xf32>,
    %c0_i32_12 = arith.constant 0 : i32
    %12 = arith.cmpi eq, %arg2, %c0_i32_12 : i32
    %13 = arith.extui %12 : i1 to i32
    %c0_i32_13 = arith.constant 0 : i32
    %14 = arith.cmpi ne, %13, %c0_i32_13 : i32
    scf.if %14 {
      %c0_14 = arith.constant 0 : index
      %c0_15 = arith.constant 0 : index
      %15 = vector.load %arg5[%c0_14, %c0_15] : memref<2x4xf32, #tpu.memory_space<vmem>>, vector<2x4xf32>
      %c0_16 = arith.constant 0 : index
      %c0_17 = arith.constant 0 : index
      %c0_18 = arith.constant 0 : index
      %16 = vector.load %arg4[%c0_16, %c0_17, %c0_18] : memref<2x2x4xf32, #tpu.memory_space<vmem>>, vector<2x1x4xf32>
      %17 = vector.shape_cast %16 : vector<2x1x4xf32> to vector<2x4xf32>
      %18 = vector.shape_cast %15 : vector<2x4xf32> to vector<2x1x4xf32>
      tpu.vector_store %arg4[%c0_16, %c0_17, %c0_18], %18 {strides = array<i32>} : memref<2x2x4xf32, #tpu.memory_space<vmem>>, vector<2x1x4xf32>,
      %c0_19 = arith.constant 0 : index
      %c0_20 = arith.constant 0 : index
      %19 = vector.load %arg6[%c0_19, %c0_20] : memref<2x4xf32, #tpu.memory_space<vmem>>, vector<2x4xf32>
      %cst_21 = arith.constant 3.906250e-03 : f32
      %20 = vector.broadcast %cst_21 : f32 to vector<2x4xf32>
      %21 = arith.mulf %19, %20 : vector<2x4xf32>
      %c0_22 = arith.constant 0 : index
      %c1 = arith.constant 1 : index
      %c0_23 = arith.constant 0 : index
      %22 = vector.load %arg4[%c0_22, %c1, %c0_23] : memref<2x2x4xf32, #tpu.memory_space<vmem>>, vector<2x1x4xf32>
      %23 = vector.shape_cast %22 : vector<2x1x4xf32> to vector<2x4xf32>
      %24 = vector.shape_cast %21 : vector<2x4xf32> to vector<2x1x4xf32>
      tpu.vector_store %arg4[%c0_22, %c1, %c0_23], %24 {strides = array<i32>} : memref<2x2x4xf32, #tpu.memory_space<vmem>>, vector<2x1x4xf32>,
    } else {
    }
    return
  }
  func.func @transform_0(%arg0: i32, %arg1: i32, %arg2: i32) -> (i32, i32, i32) {
    %c0_i32 = arith.constant 0 : i32
    return %arg0, %arg1, %arg2 : i32, i32, i32
  }
  func.func @transform_1(%arg0: i32, %arg1: i32, %arg2: i32) -> (i32, i32, i32) {
    %c0_i32 = arith.constant 0 : i32
    %c0_i32_0 = arith.constant 0 : i32
    return %arg0, %c0_i32, %arg1 : i32, i32, i32
  }
}

</mosaic_0001>

<bundles_post_ra>
// kernel: tpu_custom_call.1
= control target key start
LH: loop header
LB: loop body
LE: loop exit
PB: predicated region body
PF: predicated region fallthrough
CT: control target
= control target key end

     0   :  { %6 = vsyncpa [#allocation5], 0  ;;  %s282_s0 = inlined_call_operand.hbm [shape: f32[2,4,256], index: 0, kind: input, shape index: {}]   ;;  %s283_s1 = inlined_call_operand.hbm [shape: f32[2,2,4], index: 1, kind: output, shape index: {}]  }
   0x1   :  { %7 = vsyncpa [#allocation6], 0  ;;  %s231_s6 = smov [#allocation4]   ;;  %s183_s10 = scalar_lea.hbm %s282_s0, 256 }
   0x2   :  { %s13_s7 = sshll.u32 %s231_s6, 4  ;;  %p184_p0 = scmp.ne.s32.totalorder %s282_s0, %s183_s10  ;;  %s14_s7 = int_to_ptr.vmem [resolvable:$true] %s13_s7 }
   0x3   :  { %p187_p1 = scmp.lt.u32.totalorder %s183_s10, %s282_s0 }
   0x5   :  { %p189_p2 = pnand %p187_p1, %p184_p0 }
   0x7   :  { %192 = shalt.err (!%p189_p2)
}
   0x8   :  { %s193_s15 = scalar_lea.vmem %s14_s7, 256  ;;  %p198_p4 = scmp.lt.s32.totalorder %s14_s7, %s14_s7 }
   0x9   :  { %p194_p3 = scmp.ne.s32.totalorder %s14_s7, %s193_s15  ;;  %p199_p5 = scmp.lt.s32.totalorder %s193_s15, %s193_s15 }
   0xb   :  { %p200_p6 = por %p199_p5, %p198_p4 }
   0xd   :  { %p201_p7 = pnand %p200_p6, %p194_p3 }
   0xf   :  { %204 = shalt.err (!%p201_p7)
}
  0x10   :  { %s232_s16 = smov 128   ;;  %s233_s17 = smov 8  }
  0x11   :  { %19 = dma.hbm_to_vmem [thread:$0]  %s282_s0, 256, %s14_s7, [#allocation5], %s232_s16, %s232_s16, %s233_s17  }
  0x12   :  { %227 = dma.done.wait [#allocation5], 256  }
  0x13   :  { %228 = vsyncadd [#allocation5], 4294967040  ;;  %vm39_vm0 = vcmask 1043456   ;;  %v30_v0 = vld [vmem:[#allocation4] sm:$0xff]  ;;  %v31_v1 = vld [vmem:[#allocation4 + $0x8] sm:$0xff]  ;;  %vm27_vm1 = vcmask 25600   ;;  %v52_v18 = vlaneseq }
  0x14   :  { %v35_v2 = vcombine.high %v30_v0, %v30_v0  ;;  %v69_v3 = vsel %vm39_vm0, %v30_v0, 0.0  ;;  %v40_v4 = vsel %vm39_vm0, %v30_v0, -inf  ;;  %v36_v5 = vcombine.high %v31_v1, %v31_v1  ;;  %s237_s0 = smov [#allocation7]  }
  0x15   :  { %v74_v6 = vsel %vm39_vm0, %v31_v1, 0.0  ;;  %v45_v7 = vsel %vm39_vm0, %v31_v1, -inf  ;;  %v234_v16 = vmov 0.0   ;;  %v235_v17 = vmov -inf   ;;  %s159_s20 = sshll.u32 %s237_s0, 4  ;;  %s160_s20 = int_to_ptr.vmem [resolvable:$true] %s159_s20 }
  0x16   :  { %v70_v8 = vsel %vm39_vm0, %v35_v2, 0.0  ;;  %v41_v9 = vsel %vm39_vm0, %v35_v2, -inf  ;;  %v75_v10 = vsel %vm39_vm0, %v36_v5, 0.0  ;;  %v46_v11 = vsel %vm39_vm0, %v36_v5, -inf  ;;  %29 = vst.msk [vmem:[#allocation3] sm:$0x3] %vm27_vm1, %v234_v16  ;;  %p210_p9 = scmp.lt.s32.totalorder %s160_s20, %s160_s20 }
  0x17   :  { %v71_v12 = vadd.f32 %v70_v8, %v69_v3  ;;  %v42_v13 = vmax.f32 %v40_v4, %v41_v9  ;;  %v76_v14 = vadd.f32 %v75_v10, %v74_v6  ;;  %v47_v15 = vmax.f32 %v45_v7, %v46_v11  ;;  %28 = vst.msk [vmem:[#allocation2] sm:$0x3] %vm27_vm1, %v235_v17  ;;  %s205_s21 = scalar_lea.vmem %s160_s20, 64 }
  0x18   :  { %v53_v19 = vand.u32 127, %v52_v18  ;;  %v55_v20 = vshrl.u32 %v52_v18, 7  ;;  %vm62_vm2 = vcmask 1041409   ;;  %v236_v32 = vmov 1966171168   ;;  %p206_p8 = scmp.ne.s32.totalorder %s160_s20, %s205_s21  ;;  %p211_p10 = scmp.lt.s32.totalorder %s205_s21, %s205_s21 }
  0x19   :  { %72 = vadd.xlane.f32.xlu0 %v71_v12  ;;  %43 = vmax.xlane.f32.xlu1 %v42_v13  ;;  %v107_v33 = vunpack.c.l.s4 %v236_v32  ;;  %vm122_vm3 = vcmask 24576  }
  0x1a   :  { %v56_v23 = vsub.s32 %v53_v19, %v55_v20  ;;  %p212_p11 = por %p211_p10, %p210_p9 }
  0x1b   :  { %v108_v38 = vunpack.c.0.s8 %v107_v33 }
  0x1c   :  { %p213_p12 = pnand %p212_p11, %p206_p8 }
  0x1d   :  { %77 = vadd.xlane.f32.xlu0 %v76_v14  ;;  %48 = vmax.xlane.f32.xlu1 %v47_v15  ;;  %v68_v28 = vld [vmem:[#allocation3] sm:$0x3]  ;;  %v111_v39 = vsub.s32 %v108_v38, %v55_v20 }
  0x1e   :  { %v32_v30 = vld [vmem:[#allocation2] sm:$0x3] }
  0xa6   :  { %v73_v21 = vpop.xlane.xlu0 %72  ;;  %v44_v22 = vpop.xlane.xlu1 %43 }
  0xa7   :  { %v57_v24 = vrot.slane %v44_v22, %v56_v23  ;;  %v84_v27 = vrot.slane %v73_v21, %v56_v23 }
  0xaa   :  { %v78_v25 = vpop.xlane.xlu0 %77  ;;  %v49_v26 = vpop.xlane.xlu1 %48 }
  0xab   :  { %v88_v29 = vrot.slane %v78_v25, %v56_v23  ;;  %v61_v31 = vrot.slane %v49_v26, %v56_v23 }
  0xad   :  { %v89_v34 = vsel %vm62_vm2, %v88_v29, %v84_v27  ;;  %v63_v35 = vsel %vm62_vm2, %v61_v31, %v57_v24 }
  0xae   :  { %v91_v36 = vadd.f32 %v89_v34, %v68_v28  ;;  %v65_v37 = vmax.f32 %v32_v30, %v63_v35 }
  0xb0   :  { %92 = vst.msk [vmem:[#allocation3] sm:$0x3] %vm27_vm1, %v91_v36  ;;  %67 = vst.msk [vmem:[#allocation2] sm:$0x3] %vm27_vm1, %v65_v37 }
  0xb7   :  { %v171_v40 = vld.sshfl [vmem:[#allocation2] sm:$0x11 pattern:$0x75316420]  ;;  %v125_v41 = vld [vmem:[#allocation3] sm:$0x3] }
  0xb8   :  { %v105_v42 = vcombine.high %v171_v40, %v171_v40  ;;  %v112_v43 = vrot.slane %v171_v40, %v111_v39  ;;  %v126_v44 = vmul.f32 0.00390625, %v125_v41 }
  0xba   :  { %v119_v45 = vrot.slane %v105_v42, %v111_v39  ;;  %123 = vst.msk [vmem:[#allocation7] sm:$0x1] %vm122_vm3, %v112_v43  ;;  %v134_v46 = vrot.slane %v126_v44, %v111_v39 }
  0xbc   :  { %124 = vst.msk [vmem:[#allocation7 + $0x2] sm:$0x1] %vm122_vm3, %v119_v45  ;;  %v135_v47 = vcombine.high %v134_v46, %v134_v46  ;;  %v142_v48 = vrot.slane %v134_v46, %v111_v39 }
  0xbe   :  { %v149_v49 = vrot.slane %v135_v47, %v111_v39  ;;  %152 = vst.msk [vmem:[#allocation7 + $0x1] sm:$0x1] %vm122_vm3, %v142_v48 }
  0xc0   :  { %153 = vst.msk [vmem:[#allocation7 + $0x3] sm:$0x1] %vm122_vm3, %v149_v49 }
  0xc1   :  { %216 = shalt.err (!%p213_p12)
}
  0xc2   :  { %s217_s24 = scalar_lea.hbm %s283_s1, 64 }
  0xc3   :  { %p218_p13 = scmp.ne.s32.totalorder %s283_s1, %s217_s24  ;;  %p221_p0 = scmp.lt.u32.totalorder %s217_s24, %s283_s1 }
  0xc5   :  { %p223_p1 = pnand %p221_p0, %p218_p13 }
  0xc7   :  { %226 = shalt.err (!%p223_p1)
}
  0xc8   :  { %s238_s29 = smov 32   ;;  %s239_s30 = smov 2  }
  0xc9   :  { %165 = dma.vmem_to_hbm [thread:$0]  %s160_s20, 64, %s283_s1, [#allocation6], %s238_s29, %s238_s29, %s239_s30  }
  0xca   :  { %229 = dma.done.wait [#allocation6], 64  }
  0xcb   :  { %230 = vsyncadd [#allocation6], 4294967232 }
  0xcc   :  { %169 = vsyncpa [#allocation5], 1 }
  0xcd   :  { %170 = vsyncpa [#allocation6], 1 }

</bundles_post_ra>
